<compile_context>
chip_gen: v6e
topology: v6e:2x2x1
jax: 0.10.0
libtpu: 0.0.40
codegen_flags: <defaults>
</compile_context>

<pallas_src>
import numpy as np
import jax
import jax.numpy as jnp
from jax.experimental import pallas as pl
from jax.experimental.pallas import tpu as pltpu


# ----------------------------- Pallas kernel ------------------------------- #

def _wavedec_fused_kernel(x_ref, w1_ref, w2_ref, w3_ref, b_ref, out_ref):
    """All three mWDN levels for one batch tile.

    Each w*_ref is W_HL^T of shape (n, 2n) (bf16) whose output features are
    permuted to [H_even | H_odd | L_even | L_odd]; b_ref packs the three
    matching biases (f32).  AvgPool1d(kernel=2) therefore reduces to adding
    two contiguous half-slices.
    """
    seq = x_ref.shape[1]
    bias = b_ref[...]                                   # (1, 3.5*seq) f32

    def level(x_bf16, w_ref, b, n):
        # one fused H/L matmul on the MXU (bf16 in, f32 acc); bias+sigmoid+pool on VPU/EUP
        a = jax.nn.sigmoid(
            jnp.dot(x_bf16, w_ref[...], preferred_element_type=jnp.float32) + b)
        h = n // 2
        x_h = 0.5 * (a[:, 0:h] + a[:, h:n])             # pooled H branch (TB, n/2)
        x_l = 0.5 * (a[:, n:n + h] + a[:, n + h:2 * n]) # pooled L branch (TB, n/2)
        return x_h, x_l

    b1 = bias[:, 0:2 * seq]
    b2 = bias[:, 2 * seq:3 * seq]
    b3 = bias[:, 3 * seq:3 * seq + seq // 2]

    xh1, xl1 = level(x_ref[...], w1_ref, b1, seq)
    xh2, xl2 = level(xl1.astype(jnp.bfloat16), w2_ref, b2, seq // 2)
    xh3, xl3 = level(xl2.astype(jnp.bfloat16), w3_ref, b3, seq // 4)

    # single lane-contiguous store: [xh1 | xl1 | xh2 | xl2 | xh3 | xl3]
    out_ref[...] = jnp.concatenate([xh1, xl1, xh2, xl2, xh3, xl3], axis=1)


# ------------------------ parameter initialization ------------------------- #

def init_wave_matrix(seq_len, is_l, l_filter, h_filter, rng):
    """Deterministic replica of WaveDec.init_wave_matrix (is_comp=False)."""
    filter_list = l_filter if is_l else h_filter
    max_epsilon = float(np.min(np.abs(filter_list)))
    w = rng.randn(seq_len, seq_len) * 0.1 * max_epsilon
    for i in range(seq_len):
        filter_index = 0
        for j in range(i, seq_len):
            if filter_index < len(filter_list):
                w[i][j] = filter_list[filter_index]
                filter_index += 1
    return np.asarray(w, dtype=np.float32)


def make_wavedec_params(seq_len, l_filter, h_filter, seed=0):
    """Build all Linear weights/biases of WaveDec deterministically."""
    rng = np.random.RandomState(seed)
    params = {}
    for name, n in (("1", seq_len), ("2", seq_len // 2), ("3", seq_len // 4)):
        w_h = init_wave_matrix(n, False, l_filter, h_filter, rng)
        w_l = init_wave_matrix(n, True, l_filter, h_filter, rng)
        # nn.Linear default bias init: U(-1/sqrt(in), 1/sqrt(in))
        bound = 1.0 / np.sqrt(n)
        b_h = rng.uniform(-bound, bound, size=(n,)).astype(np.float32)
        b_l = rng.uniform(-bound, bound, size=(n,)).astype(np.float32)
        params[f"mWDN{name}_H"] = (jnp.asarray(w_h), jnp.asarray(b_h))
        params[f"mWDN{name}_L"] = (jnp.asarray(w_l), jnp.asarray(b_l))
    return params


def fuse_wavedec_params(params):
    """Hoisted layout plumbing (done once at init time).

    Per level: W_HL^T of shape (n, 2n) in bf16, output features permuted to
    [H_even | H_odd | L_even | L_odd] so the in-kernel avg-pool is a contiguous
    half-slice add.  All three biases (permuted likewise) are packed into a
    single (1, 3.5*S) f32 operand.
    """
    fused = {}
    bias_parts = []
    for lvl in ("1", "2", "3"):
        w_h, b_h = params[f"mWDN{lvl}_H"]
        w_l, b_l = params[f"mWDN{lvl}_L"]
        w_h = np.asarray(w_h); b_h = np.asarray(b_h)
        w_l = np.asarray(w_l); b_l = np.asarray(b_l)
        n = w_h.shape[0]
        perm = np.concatenate([np.arange(0, n, 2), np.arange(1, n, 2)])
        # y = x @ W^T: output feature j <-> row j of W, so permute rows/bias.
        w_hl_t = np.concatenate([w_h[perm].T, w_l[perm].T], axis=1)   # (n, 2n)
        fused[f"w{lvl}"] = jnp.asarray(w_hl_t, dtype=jnp.bfloat16)
        bias_parts.append(np.concatenate([b_h[perm], b_l[perm]]))
    fused["b"] = jnp.asarray(np.concatenate(bias_parts)[None, :], dtype=jnp.float32)
    return fused


# ------------------------------ full forward -------------------------------- #

def _round_up(v, m):
    return ((v + m - 1) // m) * m


def wavedec_forward(inputs, fused_params):
    """WaveDec.forward.  inputs: (B, seq_len).  Returns 6 tensors (B, n_k, 1)."""
    B, S = inputs.shape
    assert S % 8 == 0, "seq_len must be divisible by 8 (three halvings)"

    # Batch tile: as large as practical (fills MXU rows, amortizes per-step
    # overhead) but never larger than the (8-padded) batch itself.
    TB = min(512, _round_up(B, 8))
    Bp = _round_up(B, TB)

    x = inputs.astype(jnp.bfloat16)
    if Bp != B:
        x = jnp.pad(x, ((0, Bp - B), (0, 0)))

    widths = (S // 2, S // 2, S // 4, S // 4, S // 8, S // 8)
    out_w = sum(widths)
    bias_w = int(fused_params["b"].shape[1])

    # VMEM budget: resident weights + double-buffered x/out tiles + margin.
    weight_bytes = sum(int(np.prod(fused_params[k].shape)) *
                       fused_params[k].dtype.itemsize
                       for k in ("w1", "w2", "w3", "b"))
    tile_bytes = TB * S * 2 + TB * out_w * 4
    est = weight_bytes + 2 * tile_bytes + (4 << 20)
    vmem_limit = int(min(max(est, 32 << 20), 64 << 20))

    slab = pl.pallas_call(
        _wavedec_fused_kernel,
        out_shape=jax.ShapeDtypeStruct((Bp, out_w), jnp.float32),
        grid=(Bp // TB,),
        in_specs=[
            pl.BlockSpec((TB, S), lambda i: (i, 0)),          # x: streamed per tile
            pl.BlockSpec((S, 2 * S), lambda i: (0, 0)),        # w1: VMEM-resident
            pl.BlockSpec((S // 2, S), lambda i: (0, 0)),       # w2: VMEM-resident
            pl.BlockSpec((S // 4, S // 2), lambda i: (0, 0)),  # w3: VMEM-resident
            pl.BlockSpec((1, bias_w), lambda i: (0, 0)),       # packed biases
        ],
        out_specs=pl.BlockSpec((TB, out_w), lambda i: (i, 0)),
        compiler_params=pltpu.CompilerParams(
            dimension_semantics=("parallel",),
            vmem_limit_bytes=vmem_limit),
    )(x, fused_params["w1"], fused_params["w2"], fused_params["w3"],
      fused_params["b"])

    # slice the lane-contiguous slab into the six outputs; torch returns the
    # pooled (B, 1, n_k) tensors transposed to (B, n_k, 1).
    outs = []
    col = 0
    for w in widths:
        outs.append(slab[:B, col:col + w, None])
        col += w
    return tuple(outs)


# ------------------------------ reference ----------------------------------- #

def _ref_forward(inputs, params):
    """Pure-JAX f32 reference reproducing the PyTorch semantics (unfused params)."""
    def level(x, wh, bh, wl, bl):
        ah = jax.nn.sigmoid(x @ wh.T + bh)
        al = jax.nn.sigmoid(x @ wl.T + bl)
        pool = lambda a: 0.5 * (a[:, 0::2] + a[:, 1::2])
        return pool(ah), pool(al)

    xh_1, xl_1 = level(inputs, *params["mWDN1_H"], *params["mWDN1_L"])
    xh_2, xl_2 = level(xl_1, *params["mWDN2_H"], *params["mWDN2_L"])
    xh_3, xl_3 = level(xl_2, *params["mWDN3_H"], *params["mWDN3_L"])
    e = lambda t: t[:, :, None]
    return (e(xh_1), e(xl_1), e(xh_2), e(xl_2), e(xh_3), e(xl_3))


# --------------------------------- main ------------------------------------- #

if __name__ == "__main__":
    B = 8
    SEQ_LEN = 16
    # Haar (db1) low/high-pass filters.
    L_FILTER = [0.7071067811865476, 0.7071067811865476]
    H_FILTER = [-0.7071067811865476, 0.7071067811865476]

    params = make_wavedec_params(SEQ_LEN, L_FILTER, H_FILTER, seed=0)
    fused = fuse_wavedec_params(params)

    key = jax.random.PRNGKey(0)
    x = jax.random.normal(key, (B, SEQ_LEN), dtype=jnp.float32)

    fwd = jax.jit(wavedec_forward)
    outs = jax.block_until_ready(fwd(x, fused))

    # bf16 MXU operands -> compare against the f32 reference with a looser
    # tolerance (sigmoid saturation keeps the error small and bounded).
    refs = _ref_forward(x, params)
    for o, r in zip(outs, refs):
        assert o.shape == r.shape, (o.shape, r.shape)
        np.testing.assert_allclose(np.asarray(o), np.asarray(r),
                                   rtol=3e-2, atol=3e-2)

    print("KERNEL_OK")
</pallas_src>

<mosaic_0001>
module attributes {stable_mosaic.version = 11 : i64} {
  func.func @_wavedec_fused_kernel(%arg0: i32, %arg1: memref<8x16xbf16, #tpu.memory_space<vmem>>, %arg2: memref<16x32xbf16, #tpu.memory_space<vmem>>, %arg3: memref<8x16xbf16, #tpu.memory_space<vmem>>, %arg4: memref<4x8xbf16, #tpu.memory_space<vmem>>, %arg5: memref<1x56xf32, #tpu.memory_space<vmem>>, %arg6: memref<8x28xf32, #tpu.memory_space<vmem>>) attributes {dimension_semantics = [#tpu.dimension_semantics<parallel>], iteration_bounds = array<i64: 1>, scalar_prefetch = 0 : i64, scratch_operands = 0 : i64, tpu.core_type = #tpu.core_type<tc>, window_params = [{transform_indices = @transform_0, window_bounds = array<i64: 8, 16>}, {pipeline_mode = #tpu.pipeline_mode<synchronous>, transform_indices = @transform_1, window_bounds = array<i64: 16, 32>}, {pipeline_mode = #tpu.pipeline_mode<synchronous>, transform_indices = @transform_2, window_bounds = array<i64: 8, 16>}, {pipeline_mode = #tpu.pipeline_mode<synchronous>, transform_indices = @transform_3, window_bounds = array<i64: 4, 8>}, {pipeline_mode = #tpu.pipeline_mode<synchronous>, transform_indices = @transform_4, window_bounds = array<i64: 1, 56>}, {transform_indices = @transform_5, window_bounds = array<i64: 8, 28>}]} {
    %c0 = arith.constant 0 : index
    %c0_0 = arith.constant 0 : index
    %0 = vector.load %arg5[%c0, %c0_0] : memref<1x56xf32, #tpu.memory_space<vmem>>, vector<1x56xf32>
    %1 = vector.extract_strided_slice %0 {offsets = [0, 0], sizes = [1, 32], strides = [1, 1]} : vector<1x56xf32> to vector<1x32xf32>
    %2 = vector.extract_strided_slice %0 {offsets = [0, 32], sizes = [1, 16], strides = [1, 1]} : vector<1x56xf32> to vector<1x16xf32>
    %3 = vector.extract_strided_slice %0 {offsets = [0, 48], sizes = [1, 8], strides = [1, 1]} : vector<1x56xf32> to vector<1x8xf32>
    %c0_1 = arith.constant 0 : index
    %c0_2 = arith.constant 0 : index
    %4 = vector.load %arg1[%c0_1, %c0_2] : memref<8x16xbf16, #tpu.memory_space<vmem>>, vector<8x16xbf16>
    %c0_3 = arith.constant 0 : index
    %c0_4 = arith.constant 0 : index
    %5 = vector.load %arg2[%c0_3, %c0_4] : memref<16x32xbf16, #tpu.memory_space<vmem>>, vector<16x32xbf16>
    %cst = arith.constant dense<0.000000e+00> : vector<8x32xf32>
    %6 = tpu.matmul %4, %5, %cst {dimension_numbers = #tpu.dot_dimension_numbers<[1], [0], [0], [1], [0, 0, 1, 1], [], []>} : vector<8x16xbf16>, vector<16x32xbf16>, vector<8x32xf32> -> vector<8x32xf32>
    %7 = vector.broadcast %1 : vector<1x32xf32> to vector<8x32xf32>
    %8 = arith.addf %6, %7 : vector<8x32xf32>
    %9 = arith.negf %8 : vector<8x32xf32>
    %10 = math.exp %9 : vector<8x32xf32>
    %cst_5 = arith.constant 1.000000e+00 : f32
    %11 = vector.broadcast %cst_5 : f32 to vector<8x32xf32>
    %12 = arith.addf %11, %10 : vector<8x32xf32>
    %13 = arith.divf %11, %12 : vector<8x32xf32>
    %14 = vector.extract_strided_slice %13 {offsets = [0, 0], sizes = [8, 8], strides = [1, 1]} : vector<8x32xf32> to vector<8x8xf32>
    %15 = vector.extract_strided_slice %13 {offsets = [0, 8], sizes = [8, 8], strides = [1, 1]} : vector<8x32xf32> to vector<8x8xf32>
    %16 = arith.addf %14, %15 : vector<8x8xf32>
    %cst_6 = arith.constant 5.000000e-01 : f32
    %17 = vector.broadcast %cst_6 : f32 to vector<8x8xf32>
    %18 = arith.mulf %17, %16 : vector<8x8xf32>
    %19 = vector.extract_strided_slice %13 {offsets = [0, 16], sizes = [8, 8], strides = [1, 1]} : vector<8x32xf32> to vector<8x8xf32>
    %20 = vector.extract_strided_slice %13 {offsets = [0, 24], sizes = [8, 8], strides = [1, 1]} : vector<8x32xf32> to vector<8x8xf32>
    %21 = arith.addf %19, %20 : vector<8x8xf32>
    %cst_7 = arith.constant 5.000000e-01 : f32
    %22 = vector.broadcast %cst_7 : f32 to vector<8x8xf32>
    %23 = arith.mulf %22, %21 : vector<8x8xf32>
    %24 = arith.truncf %23 : vector<8x8xf32> to vector<8x8xbf16>
    %c0_8 = arith.constant 0 : index
    %c0_9 = arith.constant 0 : index
    %25 = vector.load %arg3[%c0_8, %c0_9] : memref<8x16xbf16, #tpu.memory_space<vmem>>, vector<8x16xbf16>
    %cst_10 = arith.constant dense<0.000000e+00> : vector<8x16xf32>
    %26 = tpu.matmul %24, %25, %cst_10 {dimension_numbers = #tpu.dot_dimension_numbers<[1], [0], [0], [1], [0, 0, 1, 1], [], []>} : vector<8x8xbf16>, vector<8x16xbf16>, vector<8x16xf32> -> vector<8x16xf32>
    %27 = vector.broadcast %2 : vector<1x16xf32> to vector<8x16xf32>
    %28 = arith.addf %26, %27 : vector<8x16xf32>
    %29 = arith.negf %28 : vector<8x16xf32>
    %30 = math.exp %29 : vector<8x16xf32>
    %cst_11 = arith.constant 1.000000e+00 : f32
    %31 = vector.broadcast %cst_11 : f32 to vector<8x16xf32>
    %32 = arith.addf %31, %30 : vector<8x16xf32>
    %33 = arith.divf %31, %32 : vector<8x16xf32>
    %34 = vector.extract_strided_slice %33 {offsets = [0, 0], sizes = [8, 4], strides = [1, 1]} : vector<8x16xf32> to vector<8x4xf32>
    %35 = vector.extract_strided_slice %33 {offsets = [0, 4], sizes = [8, 4], strides = [1, 1]} : vector<8x16xf32> to vector<8x4xf32>
    %36 = arith.addf %34, %35 : vector<8x4xf32>
    %cst_12 = arith.constant 5.000000e-01 : f32
    %37 = vector.broadcast %cst_12 : f32 to vector<8x4xf32>
    %38 = arith.mulf %37, %36 : vector<8x4xf32>
    %39 = vector.extract_strided_slice %33 {offsets = [0, 8], sizes = [8, 4], strides = [1, 1]} : vector<8x16xf32> to vector<8x4xf32>
    %40 = vector.extract_strided_slice %33 {offsets = [0, 12], sizes = [8, 4], strides = [1, 1]} : vector<8x16xf32> to vector<8x4xf32>
    %41 = arith.addf %39, %40 : vector<8x4xf32>
    %cst_13 = arith.constant 5.000000e-01 : f32
    %42 = vector.broadcast %cst_13 : f32 to vector<8x4xf32>
    %43 = arith.mulf %42, %41 : vector<8x4xf32>
    %44 = arith.truncf %43 : vector<8x4xf32> to vector<8x4xbf16>
    %c0_14 = arith.constant 0 : index
    %c0_15 = arith.constant 0 : index
    %45 = vector.load %arg4[%c0_14, %c0_15] : memref<4x8xbf16, #tpu.memory_space<vmem>>, vector<4x8xbf16>
    %cst_16 = arith.constant dense<0.000000e+00> : vector<8x8xf32>
    %46 = tpu.matmul %44, %45, %cst_16 {dimension_numbers = #tpu.dot_dimension_numbers<[1], [0], [0], [1], [0, 0, 1, 1], [], []>} : vector<8x4xbf16>, vector<4x8xbf16>, vector<8x8xf32> -> vector<8x8xf32>
    %47 = vector.broadcast %3 : vector<1x8xf32> to vector<8x8xf32>
    %48 = arith.addf %46, %47 : vector<8x8xf32>
    %49 = arith.negf %48 : vector<8x8xf32>
    %50 = math.exp %49 : vector<8x8xf32>
    %cst_17 = arith.constant 1.000000e+00 : f32
    %51 = vector.broadcast %cst_17 : f32 to vector<8x8xf32>
    %52 = arith.addf %51, %50 : vector<8x8xf32>
    %53 = arith.divf %51, %52 : vector<8x8xf32>
    %54 = vector.extract_strided_slice %53 {offsets = [0, 0], sizes = [8, 2], strides = [1, 1]} : vector<8x8xf32> to vector<8x2xf32>
    %55 = vector.extract_strided_slice %53 {offsets = [0, 2], sizes = [8, 2], strides = [1, 1]} : vector<8x8xf32> to vector<8x2xf32>
    %56 = arith.addf %54, %55 : vector<8x2xf32>
    %cst_18 = arith.constant 5.000000e-01 : f32
    %57 = vector.broadcast %cst_18 : f32 to vector<8x2xf32>
    %58 = arith.mulf %57, %56 : vector<8x2xf32>
    %59 = vector.extract_strided_slice %53 {offsets = [0, 4], sizes = [8, 2], strides = [1, 1]} : vector<8x8xf32> to vector<8x2xf32>
    %60 = vector.extract_strided_slice %53 {offsets = [0, 6], sizes = [8, 2], strides = [1, 1]} : vector<8x8xf32> to vector<8x2xf32>
    %61 = arith.addf %59, %60 : vector<8x2xf32>
    %cst_19 = arith.constant 5.000000e-01 : f32
    %62 = vector.broadcast %cst_19 : f32 to vector<8x2xf32>
    %63 = arith.mulf %62, %61 : vector<8x2xf32>
    %64 = tpu.concatenate %18, %23, %38, %43, %58, %63 in 1 : vector<8x8xf32>, vector<8x8xf32>, vector<8x4xf32>, vector<8x4xf32>, vector<8x2xf32>, vector<8x2xf32> -> vector<8x28xf32>
    %c0_20 = arith.constant 0 : index
    %c0_21 = arith.constant 0 : index
    %65 = vector.load %arg6[%c0_20, %c0_21] : memref<8x28xf32, #tpu.memory_space<vmem>>, vector<8x28xf32>
    tpu.vector_store %arg6[%c0_20, %c0_21], %64 {strides = array<i32>} : memref<8x28xf32, #tpu.memory_space<vmem>>, vector<8x28xf32>,
    return
  }
  func.func @transform_0(%arg0: i32) -> (i32, i32) {
    %c0_i32 = arith.constant 0 : i32
    %c0_i32_0 = arith.constant 0 : i32
    return %arg0, %c0_i32 : i32, i32
  }
  func.func @transform_1(%arg0: i32) -> (i32, i32) {
    %c0_i32 = arith.constant 0 : i32
    %c0_i32_0 = arith.constant 0 : i32
    %c0_i32_1 = arith.constant 0 : i32
    return %c0_i32, %c0_i32_0 : i32, i32
  }
  func.func @transform_2(%arg0: i32) -> (i32, i32) {
    %c0_i32 = arith.constant 0 : i32
    %c0_i32_0 = arith.constant 0 : i32
    %c0_i32_1 = arith.constant 0 : i32
    return %c0_i32, %c0_i32_0 : i32, i32
  }
  func.func @transform_3(%arg0: i32) -> (i32, i32) {
    %c0_i32 = arith.constant 0 : i32
    %c0_i32_0 = arith.constant 0 : i32
    %c0_i32_1 = arith.constant 0 : i32
    return %c0_i32, %c0_i32_0 : i32, i32
  }
  func.func @transform_4(%arg0: i32) -> (i32, i32) {
    %c0_i32 = arith.constant 0 : i32
    %c0_i32_0 = arith.constant 0 : i32
    %c0_i32_1 = arith.constant 0 : i32
    return %c0_i32, %c0_i32_0 : i32, i32
  }
  func.func @transform_5(%arg0: i32) -> (i32, i32) {
    %c0_i32 = arith.constant 0 : i32
    %c0_i32_0 = arith.constant 0 : i32
    return %arg0, %c0_i32 : i32, i32
  }
}

</mosaic_0001>

<bundles_post_ra>
// kernel: wavedec_forward.1
= control target key start
LH: loop header
LB: loop body
LE: loop exit
PB: predicated region body
PF: predicated region fallthrough
CT: control target
= control target key end

     0   :  { %v318_v0 = vmov 0.0   ;;  %vm319_vm0 = vmmov 0   ;;  %vm37_vm1 = vcmask 130048   ;;  %vm105_vm2 = vcmask 1043456   ;;  %s320_s24 = smov 120   ;;  %s322_s25 = smov 112   ;;  %s391_s1 = inlined_call_operand.vmem [shape: bf16[16,32], index: 1, kind: input, shape index: {}]   ;;  %s392_s0 = inlined_call_operand.vmem [shape: bf16[8,16], index: 0, kind: input, shape index: {}]   ;;  %s393_s4 = inlined_call_operand.vmem [shape: f32[1,56], index: 4, kind: input, shape index: {}]   ;;  %s394_s2 = inlined_call_operand.vmem [shape: bf16[8,16], index: 2, kind: input, shape index: {}]   ;;  %s395_s3 = inlined_call_operand.vmem [shape: bf16[4,8], index: 3, kind: input, shape index: {}]   ;;  %s396_s5 = inlined_call_operand.vmem [shape: f32[8,28], index: 5, kind: output, shape index: {}]  }
   0x1   :  { %275 = vmatprep.subr.bf16.mxu0 %v318_v0  ;;  %v305_v1 = vld [vmem:[%s391_s1] sm:$0xff]   ;;  %277 = vmatprep.mubr.msk.bf16.mxu0 %vm319_vm0, %v318_v0  ;;  %vm101_vm3 = vcmask 64512   ;;  %vm173_vm4 = vcmask 1041408   ;;  %s323_s27 = smov 124   ;;  %s324_s28 = smov 80   ;;  %vm169_vm5 = vcmask 31744  }
   0x2   :  { %281 = vmatprep.subr.bf16.mxu1 %v318_v0  ;;  %283 = vmatprep.mubr.msk.bf16.mxu1 %vm319_vm0, %v318_v0  ;;  %v22_v2 = vld [vmem:[%s392_s0] sm:$0xf]  ;;  %s325_s29 = smov 12   ;;  %s327_s30 = smov 16   ;;  %vm249_vm6 = vcmask 162816   ;;  %vm251_vm7 = vcmask 195584  }
   0x3   :  { %276 = vmatpush3.bf16.msra.mxu0 %v305_v1  ;;  %v261_v3 = vld [vmem:[%s393_s4] ss:$0 sm:$0xff]  ;;  %s321_s4 = smov 96   ;;  %s328_s6 = smov 22   ;;  %vm253_vm8 = vcmask 211968   ;;  %vm255_vm9 = vcmask 228352  }
   0x4   :  { %287 = vmatprep.subr.bf16.mxu0 %v318_v0  ;;  %v94_v12 = vld [vmem:[%s394_s2] sm:$0xf]  ;;  %98 = vrot.lane.b32.xlu1 %v261_v3, %s321_s4  ;;  %s329_s7 = smov 24  }
   0x5   :  { %v107_v13 = vsel %vm105_vm2, %v94_v12, 0  ;;  %v162_v29 = vld [vmem:[%s395_s3] sm:$0x3]  ;;  %s326_s3 = smov 126  }
   0x6   :  { %278 = vmatmul.mubr.msk.bf16.vlgmr.msra.gmra.mxu0 %vm37_vm1, %v22_v2  ;;  %282 = vmatpush3.bf16.msra.mxu1 %v107_v13  ;;  %v175_v30 = vsel %vm173_vm4, %v162_v29, 0 }
   0x7   :  { %289 = vmatprep.mubr.msk.bf16.mxu0 %vm319_vm0, %v318_v0  ;;  %288 = vmatpush3.bf16.msra.mxu0 %v175_v30 }
  0x76   :  { %v99_v20 = vpop.permute.xlu1 %98 }
  0xc6   :  { %v75_v4 = vpop.f32.mrf.mxu0 }
  0xc7   :  { %v76_v5 = vadd.f32 %v261_v3, %v75_v4 }
  0xc8   :  { %v279_v6 = vpop.f32.mrf.mxu0 }
  0xc9   :  { %v264_v7 = vmul.f32 -1.442695, %v76_v5 }
  0xca   :  { %v78_v8 = vpop.f32.mrf.mxu0 }
  0xcb   :  { %306 = vpow2.f32 %v264_v7 }
  0xcc   :  { %v280_v9 = vpop.f32.mrf.mxu0 }
  0xd8   :  { %v307_v10 = vpop.eup %306 }
  0xd9   :  { %v84_v11 = vadd.f32 1.0, %v307_v10 }
  0xdb   :  { %308 = vrcp.f32 %v84_v11 }
  0xe8   :  { %v309_v14 = vpop.eup %308 }
  0xe9   :  { %88 = vrot.lane.b32.xlu0 %v309_v14, %s320_s24 }
 0x15b   :  { %v89_v15 = vpop.permute.xlu0 %88 }
 0x15c   :  { %v91_v16 = vadd.f32 %v309_v14, %v89_v15 }
 0x15e   :  { %v374_v17 = vmul.f32 0.5, %v91_v16 }
 0x160   :  { %v93_v18 = vpack.c.bf16 %v374_v17, %v374_v17 }
 0x162   :  { %96 = vrot.lane.b32.xlu0 %v93_v18, %s322_s25 }
 0x1d4   :  { %v97_v19 = vpop.permute.xlu0 %96 }
 0x1d5   :  { %284 = vmatmul.mubr.msk.bf16.vlgmr.msra.gmra.mxu1 %vm101_vm3, %v97_v19 }
 0x295   :  { %v143_v21 = vpop.f32.mrf.mxu1 }
 0x296   :  { %v144_v22 = vadd.f32 %v143_v21, %v99_v20 }
 0x297   :  { %v285_v23 = vpop.f32.mrf.mxu1 }
 0x298   :  { %v266_v24 = vmul.f32 -1.442695, %v144_v22 }
 0x299   :  { %v146_v25 = vpop.f32.mrf.mxu1 }
 0x29a   :  { %310 = vpow2.f32 %v266_v24 }
 0x29b   :  { %v286_v26 = vpop.f32.mrf.mxu1 }
 0x2a7   :  { %v311_v27 = vpop.eup %310 }
 0x2a8   :  { %v152_v28 = vadd.f32 1.0, %v311_v27 }
 0x2aa   :  { %312 = vrcp.f32 %v152_v28 }
 0x2b7   :  { %v313_v31 = vpop.eup %312 }
 0x2b8   :  { %156 = vrot.lane.b32.xlu1 %v313_v31, %s323_s27 }
 0x2bc   :  { %166 = vrot.lane.b32.xlu1 %v261_v3, %s324_s28 }
 0x2c0   :  { %230 = vrot.lane.b32.xlu1 %v374_v17, %s320_s24 }
 0x32a   :  { %v157_v32 = vpop.permute.xlu1 %156 }
 0x32b   :  { %v159_v33 = vadd.f32 %v313_v31, %v157_v32 }
 0x32d   :  { %v160_v34 = vmul.f32 0.5, %v159_v33 }
 0x32e   :  { %v167_v37 = vpop.permute.xlu1 %166 }
 0x32f   :  { %237 = vrot.lane.b32.xlu1 %v160_v34, %s325_s29  ;;  %v161_v35 = vpack.c.bf16 %v160_v34, %v160_v34 }
 0x331   :  { %164 = vrot.lane.b32.xlu0 %v161_v35, %s320_s24 }
 0x332   :  { %v231_v50 = vpop.permute.xlu1 %230 }
 0x333   :  { %v247_v52 = vsel %vm101_vm3, %v374_v17, %v231_v50 }
 0x3a1   :  { %v238_v53 = vpop.permute.xlu1 %237 }
 0x3a3   :  { %v165_v36 = vpop.permute.xlu0 %164 }
 0x3a4   :  { %290 = vmatmul.mubr.msk.bf16.vlgmr.msra.gmra.mxu0 %vm169_vm5, %v165_v36 }
 0x464   :  { %v211_v38 = vpop.f32.mrf.mxu0 }
 0x465   :  { %v212_v39 = vadd.f32 %v211_v38, %v167_v37 }
 0x466   :  { %v291_v40 = vpop.f32.mrf.mxu0 }
 0x467   :  { %v268_v41 = vmul.f32 -1.442695, %v212_v39 }
 0x468   :  { %v214_v42 = vpop.f32.mrf.mxu0 }
 0x469   :  { %314 = vpow2.f32 %v268_v41 }
 0x46a   :  { %v292_v43 = vpop.f32.mrf.mxu0 }
 0x476   :  { %v315_v44 = vpop.eup %314 }
 0x477   :  { %v220_v45 = vadd.f32 1.0, %v315_v44 }
 0x479   :  { %316 = vrcp.f32 %v220_v45 }
 0x486   :  { %v317_v46 = vpop.eup %316 }
 0x487   :  { %224 = vrot.lane.b32.xlu0 %v317_v46, %s326_s3 }
 0x48b   :  { %234 = vrot.lane.b32.xlu0 %v160_v34, %s327_s30 }
 0x4f9   :  { %v225_v47 = vpop.permute.xlu0 %224 }
 0x4fa   :  { %v227_v48 = vadd.f32 %v317_v46, %v225_v47 }
 0x4fc   :  { %v228_v49 = vmul.f32 0.5, %v227_v48 }
 0x4fd   :  { %v235_v51 = vpop.permute.xlu0 %234 }
 0x4fe   :  { %244 = vrot.lane.b32.xlu1 %v228_v49, %s328_s6  ;;  %241 = vrot.lane.b32.xlu0 %v228_v49, %s329_s7  ;;  %v248_v54 = vsel %vm37_vm1, %v247_v52, %v235_v51 }
 0x4ff   :  { %v250_v56 = vsel %vm249_vm6, %v248_v54, %v238_v53 }
 0x570   :  { %v245_v55 = vpop.permute.xlu1 %244  ;;  %v242_v57 = vpop.permute.xlu0 %241 }
 0x571   :  { %v252_v58 = vsel %vm251_vm7, %v250_v56, %v242_v57 }
 0x572   :  { %v254_v59 = vsel %vm253_vm8, %v252_v58, %v245_v55 }
 0x573   :  { %256 = vst.msk [vmem:[%s396_s5] sm:$0xff] %vm255_vm9, %v254_v59 }

</bundles_post_ra>
